<compile_context>
chip_gen: v7x
topology: tpu7x:2x2x1
jax: 0.10.0
libtpu: 0.0.40
codegen_flags: <defaults>
</compile_context>

<pallas_src>
import jax
import jax.numpy as jnp
from jax.experimental import pallas as pl
from jax.experimental.pallas import tpu as pltpu


def _affine_stream_kernel(x_ref, s_ref, b_ref, o_ref):
    """Pure streaming elementwise affine.

    x_ref : VMEM [TM, TN]  input tile (native dtype)
    s_ref : VMEM [TM, 1]   per-row effective scale (f32)
    b_ref : VMEM [TM, 1]   per-row effective bias  (f32)
    o_ref : VMEM [TM, TN]  output tile (native dtype)
    """
    x = x_ref[...].astype(jnp.float32)
    s = s_ref[...]                      # (TM, 1) -> broadcast along lanes
    b = b_ref[...]
    o_ref[...] = (x * s + b).astype(o_ref.dtype)


def _choose_tile(dim, align, max_tile):
    """Largest multiple of `align` that divides `dim`, capped at `max_tile`.

    Falls back to the full extent when `dim` is not `align`-divisible
    (full-extent blocks are always legal on TPU)."""
    if dim % align != 0:
        return dim
    best = align
    t = align
    limit = min(dim, max_tile)
    while t <= limit:
        if dim % t == 0:
            best = t
        t += align
    return best


def _compose_affines(scales, biases, order):
    """Fold the shuffled chain x -> x*s+b (applied in `order`) into one affine.

    Returns (eff_s, eff_b) of shape (C,) in f32 such that applying
    transforms order[0], order[1], ... sequentially equals x*eff_s + eff_b.
    """
    c = scales.shape[1]

    def body(carry, idx):
        es, eb = carry
        s = scales[idx].astype(jnp.float32)
        b = biases[idx].astype(jnp.float32)
        return (es * s, eb * s + b), None

    (eff_s, eff_b), _ = jax.lax.scan(
        body,
        (jnp.ones((c,), jnp.float32), jnp.zeros((c,), jnp.float32)),
        order)
    return eff_s, eff_b


def random_order_forward(x, scales, biases, order, *, training=True):
    """JAX/Pallas equivalent of RandomOrder.forward.

    x      : [N, C, H, W]  (any float dtype; HBM traffic stays in this dtype)
    scales : f32[T, C]     per-transform per-channel scale
    biases : f32[T, C]     per-transform per-channel bias
    order  : i32[T]        shuffled application order (host/JAX generated)
    """
    if not training:
        # no-op during inference (module in eval mode)
        return x

    n, c, h, w = x.shape
    hw = h * w
    r = n * c

    # --- tiny (T, C) composition of the shuffled chain (done once, in JAX) ---
    eff_s, eff_b = _compose_affines(scales, biases, order)

    # Per-row parameter slabs for the flattened (N*C, HW) view
    # (row index = i_n * C + i_c  -> tile the per-channel params N times).
    row_s = jnp.tile(eff_s, n).reshape(r, 1)
    row_b = jnp.tile(eff_b, n).reshape(r, 1)

    x2 = x.reshape(r, hw)

    # Dense tiles: rows in multiples of 8 sublanes, lanes in multiples of 128.
    # Caps keep the double-buffered in+out footprint well under the default
    # 32 MiB scoped VMEM on every generation (v5e/v6e/v7x).
    tm = _choose_tile(r, 8, 256)       # rows per block
    tn = _choose_tile(hw, 128, 2048)   # lanes per block
    grid = (pl.cdiv(r, tm), pl.cdiv(hw, tn))

    out2 = pl.pallas_call(
        _affine_stream_kernel,
        out_shape=jax.ShapeDtypeStruct((r, hw), x.dtype),
        grid_spec=pl.GridSpec(
            grid=grid,
            in_specs=[
                pl.BlockSpec((tm, tn), lambda i, j: (i, j)),
                pl.BlockSpec((tm, 1), lambda i, j: (i, 0)),
                pl.BlockSpec((tm, 1), lambda i, j: (i, 0)),
            ],
            out_specs=pl.BlockSpec((tm, tn), lambda i, j: (i, j)),
        ),
        compiler_params=pltpu.CompilerParams(
            # Elementwise: every grid point independent -> megacore-shardable.
            dimension_semantics=("parallel", "parallel")),
    )(x2, row_s, row_b)

    return out2.reshape(n, c, h, w)


if __name__ == "__main__":
    key = jax.random.PRNGKey(0)
    k_x, k_perm = jax.random.split(key)

    N, C, H, W = 2, 4, 16, 16
    T = 3  # number of transforms in the list

    x = jax.random.normal(k_x, (N, C, H, W), dtype=jnp.float32)

    # Deterministic "parameters" of the T sub-transforms (per-channel affine).
    scales = (0.5 + 0.25 * jnp.arange(T * C, dtype=jnp.float32)).reshape(T, C)
    biases = (0.1 * jnp.arange(T * C, dtype=jnp.float32) - 0.3).reshape(T, C)

    # Deterministic shuffled order (stands in for random.shuffle at forward time).
    order = jax.random.permutation(k_perm, T).astype(jnp.int32)

    # --- training mode: transforms applied in shuffled order -----------------
    out = random_order_forward(x, scales, biases, order, training=True)
    out = jax.block_until_ready(out)

    # Pure-JAX sequential reference for correctness.
    ref = x
    for i in list(jax.device_get(order)):
        ref = ref * scales[i][None, :, None, None] + biases[i][None, :, None, None]
    # Pre-composition changes f32 rounding order slightly (~ULP level); well
    # within this tolerance.
    assert jnp.allclose(out, ref, atol=1e-4, rtol=1e-5), "mismatch vs reference"

    # --- eval mode: no-op -----------------------------------------------------
    out_eval = random_order_forward(x, scales, biases, order, training=False)
    out_eval = jax.block_until_ready(out_eval)
    assert jnp.array_equal(out_eval, x), "eval mode must be identity"

    print("KERNEL_OK")
</pallas_src>

<mosaic_0001>
module attributes {stable_mosaic.version = 11 : i64} {
  func.func @_affine_stream_kernel(%arg0: i32, %arg1: i32, %arg2: memref<8x256xf32, #tpu.memory_space<vmem>>, %arg3: memref<8x1xf32, #tpu.memory_space<vmem>>, %arg4: memref<8x1xf32, #tpu.memory_space<vmem>>, %arg5: memref<8x256xf32, #tpu.memory_space<vmem>>) attributes {dimension_semantics = [#tpu.dimension_semantics<parallel>, #tpu.dimension_semantics<parallel>], iteration_bounds = array<i64: 1, 1>, scalar_prefetch = 0 : i64, scratch_operands = 0 : i64, tpu.core_type = #tpu.core_type<tc>, window_params = [{transform_indices = @transform_0, window_bounds = array<i64: 8, 256>}, {transform_indices = @transform_1, window_bounds = array<i64: 8, 1>}, {transform_indices = @transform_2, window_bounds = array<i64: 8, 1>}, {transform_indices = @transform_3, window_bounds = array<i64: 8, 256>}]} {
    %c0 = arith.constant 0 : index
    %c0_0 = arith.constant 0 : index
    %0 = vector.load %arg2[%c0, %c0_0] : memref<8x256xf32, #tpu.memory_space<vmem>>, vector<8x256xf32>
    %c0_1 = arith.constant 0 : index
    %c0_2 = arith.constant 0 : index
    %1 = vector.load %arg3[%c0_1, %c0_2] : memref<8x1xf32, #tpu.memory_space<vmem>>, vector<8x1xf32>
    %c0_3 = arith.constant 0 : index
    %c0_4 = arith.constant 0 : index
    %2 = vector.load %arg4[%c0_3, %c0_4] : memref<8x1xf32, #tpu.memory_space<vmem>>, vector<8x1xf32>
    %3 = vector.broadcast %1 : vector<8x1xf32> to vector<8x256xf32>
    %4 = arith.mulf %0, %3 : vector<8x256xf32>
    %5 = vector.broadcast %2 : vector<8x1xf32> to vector<8x256xf32>
    %6 = arith.addf %4, %5 : vector<8x256xf32>
    %c0_5 = arith.constant 0 : index
    %c0_6 = arith.constant 0 : index
    %7 = vector.load %arg5[%c0_5, %c0_6] : memref<8x256xf32, #tpu.memory_space<vmem>>, vector<8x256xf32>
    tpu.vector_store %arg5[%c0_5, %c0_6], %6 {strides = array<i32>} : memref<8x256xf32, #tpu.memory_space<vmem>>, vector<8x256xf32>,
    return
  }
  func.func @transform_0(%arg0: i32, %arg1: i32) -> (i32, i32) {
    %c0_i32 = arith.constant 0 : i32
    return %arg0, %arg1 : i32, i32
  }
  func.func @transform_1(%arg0: i32, %arg1: i32) -> (i32, i32) {
    %c0_i32 = arith.constant 0 : i32
    %c0_i32_0 = arith.constant 0 : i32
    return %arg0, %c0_i32 : i32, i32
  }
  func.func @transform_2(%arg0: i32, %arg1: i32) -> (i32, i32) {
    %c0_i32 = arith.constant 0 : i32
    %c0_i32_0 = arith.constant 0 : i32
    return %arg0, %c0_i32 : i32, i32
  }
  func.func @transform_3(%arg0: i32, %arg1: i32) -> (i32, i32) {
    %c0_i32 = arith.constant 0 : i32
    return %arg0, %arg1 : i32, i32
  }
}

</mosaic_0001>

<bundles_post_ra>
// kernel: tpu_custom_call.1
= control target key start
LH: loop header
LB: loop body
LE: loop exit
PB: predicated region body
PF: predicated region fallthrough
CT: control target
= control target key end

     0   :  { %s122_s0 = inlined_call_operand.vmem [shape: f32[8,256], index: 0, kind: input, shape index: {}]   ;;  %s123_s1 = inlined_call_operand.vmem [shape: f32[8,1], index: 1, kind: input, shape index: {}]   ;;  %s124_s2 = inlined_call_operand.vmem [shape: f32[8,1], index: 2, kind: input, shape index: {}]   ;;  %s125_s3 = inlined_call_operand.hbm [shape: f32[8,256], index: 3, kind: output, shape index: {}]  }
   0x1   :  { %v17_v0 = vld [vmem:[%s123_s1] sm:$0xff] }
   0x2   :  { %8 = vsyncpa [#allocation3], 0  ;;  %v76_v1 = vmov 0   ;;  %v18_v2 = vld [vmem:[%s124_s2] sm:$0xff]  ;;  %v16_v5 = vld [vmem:[%s122_s0 + $0x8] sm:$0xff]  ;;  %s77_s20 = smov [#allocation2]  }
   0x3   :  { %51 = vset.pattern.permute.xlu0 %v76_v1  ;;  %v15_v4 = vld [vmem:[%s122_s0] sm:$0xff]  ;;  %s41_s1 = sshll.u32 %s77_s20, 4  ;;  %s42_s1 = int_to_ptr.vmem [resolvable:$true] %s41_s1 }
   0x4   :  { %21 = vperm.xlu0 %51, %v17_v0   ;;  %s52_s2 = scalar_lea.vmem %s42_s1, 256  ;;  %p57_p1 = scmp.lt.s32.totalorder %s42_s1, %s42_s1 }
   0x5   :  { %p53_p0 = scmp.ne.s32.totalorder %s42_s1, %s52_s2  ;;  %p58_p2 = scmp.lt.s32.totalorder %s52_s2, %s52_s2 }
   0x7   :  { %p59_p3 = por %p58_p2, %p57_p1 }
   0x8   :  { %28 = vperm.xlu0 %51, %v18_v2  }
   0x9   :  { %p60_p4 = pnand %p59_p3, %p53_p0 }
  0x83   :  { %v22_v3 = vpop.permute.xlu0 %21 }
  0x84   :  { %v24_v6 = vmul.f32 %v22_v3, %v15_v4  ;;  %v25_v7 = vmul.f32 %v22_v3, %v16_v5 }
  0x87   :  { %v29_v8 = vpop.permute.xlu0 %28 }
  0x88   :  { %v31_v9 = vadd.f32 %v29_v8, %v24_v6  ;;  %v32_v10 = vadd.f32 %v29_v8, %v25_v7 }
  0x8a   :  { %33 = vst [vmem:[#allocation2] sm:$0xff] %v31_v9  ;;  %34 = vst [vmem:[#allocation2 + $0x8] sm:$0xff] %v32_v10 }
  0x8b   :  { %63 = shalt.err (!%p60_p4)
}
  0x8c   :  { %s64_s0 = scalar_lea.hbm %s125_s3, 256 }
  0x8d   :  { %p65_p5 = scmp.ne.s32.totalorder %s125_s3, %s64_s0  ;;  %p68_p6 = scmp.lt.u32.totalorder %s64_s0, %s125_s3 }
  0x8f   :  { %p70_p7 = pnand %p68_p6, %p65_p5 }
  0x91   :  { %73 = shalt.err (!%p70_p7)
}
  0x92   :  { %44 = dma.vmem_to_hbm [thread:$0]  %s42_s1, 256, %s125_s3, [#allocation3]  }
  0x93   :  { %74 = dma.done.wait [#allocation3], 256  }
  0x94   :  { %75 = vsyncadd [#allocation3], 4294967040 }
  0x95   :  { %48 = vsyncpa [#allocation3], 1 }

</bundles_post_ra>
